<compile_context>
chip_gen: v5e
topology: v5e:2x2
jax: 0.10.0
libtpu: 0.0.40
codegen_flags: <defaults>
</compile_context>

<pallas_src>
import math
import functools

import jax
import jax.numpy as jnp
from jax import lax
from jax.experimental import pallas as pl
from jax.experimental.pallas import tpu as pltpu


# f32 keeps the kernel runnable everywhere (incl. interpret mode); flip to
# jnp.bfloat16 on real v6e/v7x runs for ~2x MXU throughput.
_MATMUL_DTYPE = jnp.float32


@functools.lru_cache(maxsize=None)
def _vmem_limit_bytes():
    """Generation-aware scoped-VMEM budget (<=48 MiB on 64 MiB parts)."""
    try:
        cap = pltpu.get_tpu_info().vmem_capacity_bytes
        return min(int(cap * 3 // 4), 100 * 1024 * 1024)
    except Exception:
        return 48 * 1024 * 1024


def _cparams(*dimension_semantics):
    return pltpu.CompilerParams(dimension_semantics=dimension_semantics,
                                vmem_limit_bytes=_vmem_limit_bytes())


def _layernorm(x, w, b, eps=1e-5):
    # torch.nn.LayerNorm semantics: biased variance, eps inside sqrt.
    mu = jnp.mean(x, axis=-1, keepdims=True)
    xc = x - mu
    var = jnp.mean(xc * xc, axis=-1, keepdims=True)
    return xc * lax.rsqrt(var + eps) * w + b


# Exact (erf-based) GELU.  erf is evaluated with the XLA f32 rational
# approximation so it lowers to plain mul/add/div inside Mosaic.
_ERF_NUM = (0.00022905065861350646, 0.0034082910107109506, 0.050955695062380861,
            0.18520832239976145, 1.128379143519084)
_ERF_DEN = (-1.1791602954361697e-07, 2.3547966471313185e-05, 0.0010179625278914885,
            0.014070470171167667, 0.11098505178285362, 0.49746925110067538, 1.0)


def _gelu_erf(x):
    z = jnp.clip(x * (1.0 / math.sqrt(2.0)), -4.0, 4.0)
    z2 = z * z
    num = _ERF_NUM[0]
    for c in _ERF_NUM[1:]:
        num = num * z2 + c
    den = _ERF_DEN[0]
    for c in _ERF_DEN[1:]:
        den = den * z2 + c
    erf = (z * num) / den
    return 0.5 * x * (1.0 + erf)


def _mm(a, b):
    """Matmul with a single dtype knob for the MXU inputs (f32 accumulate)."""
    return jnp.dot(a.astype(_MATMUL_DTYPE), b.astype(_MATMUL_DTYPE),
                   preferred_element_type=jnp.float32)


# ------------------------ fused transformer block kernel ---------------------
def _layer_kernel(num_splats, tq,
                  x_ref, wpos_ref, bpos_ref, posb_ref, spos_ref, splat_sq_ref,
                  neg_coef_ref, wqkv_ref, oln_w_ref, oln_b_ref,
                  ln1w_ref, ln1b_ref, w1_ref, b1_ref, w2_ref, b2_ref,
                  ln2w_ref, ln2b_ref, gates_ref, resw_ref,
                  out_ref, wrow_ref, wcol_ref, comb_ref):
    x = x_ref[0]                                   # [S, D] f32
    S, D = x.shape

    # --- token positions: tanh(Linear(x)) + positional_bias[:S] ---
    pos = jnp.tanh(_mm(x, wpos_ref[...]) + bpos_ref[...]) + posb_ref[...]   # [S, E]

    # --- spatial influence, lane-dense [N, S] layout ---
    pos_sq = jnp.sum(pos * pos, axis=-1)[None, :]                           # [1, S]
    cross = lax.dot_general(spos_ref[...].astype(_MATMUL_DTYPE),
                            pos.astype(_MATMUL_DTYPE),
                            (((1,), (1,)), ((), ())),
                            preferred_element_type=jnp.float32)             # [N, S]
    dist_sq = jnp.maximum(splat_sq_ref[...] + pos_sq - 2.0 * cross, 0.0)    # [N, S]
    infl = jnp.maximum(jnp.exp(dist_sq * neg_coef_ref[...]), 0.01)          # [N, S]
    # Two bulk stores (row layout and column layout) -- no per-splat narrow
    # masked stores, and the splat fori_loop below can index them dynamically.
    wrow_ref[...] = infl[:, None, :]               # [N, 1, S]
    wcol_ref[...] = infl[:, :, None]               # [N, S, 1]

    # --- fused q/k/v projection (1/sqrt(D) folded into Wq at init) ---
    qkv = _mm(x, wqkv_ref[...])                    # [S, 3D]
    q = qkv[:, :D]
    k = qkv[:, D:2 * D]
    v = qkv[:, 2 * D:]

    # --- splat attention tiled over query rows, causal key-range skip ---
    # TODO(synk): for very large S, add an inner key-tile fori_loop with an
    # online (flash-style) softmax instead of the full [tq, kv] working set.
    n_tiles = pl.cdiv(S, tq)
    for t in range(n_tiles):
        r0 = t * tq
        rows = min(tq, S - r0)
        kv = r0 + rows                             # causal: keys [0, kv)
        q_t = q[r0:r0 + rows]                      # [rows, D]
        base = lax.dot_general(q_t.astype(_MATMUL_DTYPE),
                               k[:kv].astype(_MATMUL_DTYPE),
                               (((1,), (1,)), ((), ())),
                               preferred_element_type=jnp.float32)          # [rows, kv]
        # Fold the causal mask into base ONCE (w_col*w_row >= 1e-4, so masked
        # entries stay <= -1e5 and vanish after softmax, matching masked_fill).
        row_g = r0 + lax.broadcasted_iota(jnp.int32, (rows, kv), 0)
        col_g = lax.broadcasted_iota(jnp.int32, (rows, kv), 1)
        base = jnp.where(row_g >= col_g, base, -1e9)

        def splat_body(s, p_acc):
            w_key = wrow_ref[s][:, :kv]            # [1, kv]
            w_qry = wcol_ref[s][r0:r0 + rows]      # [rows, 1]
            scores = base * w_qry * w_key
            m = jnp.max(scores, axis=-1, keepdims=True)
            e = jnp.exp(scores - m)
            l = jnp.sum(e, axis=-1, keepdims=True)
            g = gates_ref[s]                       # sigmoid(gate_s) / num_splats
            return p_acc + (g * pl.reciprocal(l, approx=True)) * e

        p = lax.fori_loop(0, num_splats, splat_body,
                          jnp.zeros((rows, kv), jnp.float32))
        # single (sum_s gate_s * attn_s) @ v matmul (mean folded into gates)
        comb_ref[r0:r0 + rows] = _mm(p, v[:kv])    # [rows, D]

    combined = comb_ref[...]                       # [S, D]
    rw = resw_ref[0]                               # sigmoid(residual_weight)
    attn_out = _layernorm(rw * x + (1.0 - rw) * combined,
                          oln_w_ref[...], oln_b_ref[...])

    # --- residual + LN1, fused GELU feed-forward, residual + LN2 ---
    y = _layernorm(x + attn_out, ln1w_ref[...], ln1b_ref[...])
    h = _gelu_erf(_mm(y, w1_ref[...]) + b1_ref[...])
    f = _mm(h, w2_ref[...]) + b2_ref[...]
    out_ref[0] = _layernorm(y + f, ln2w_ref[...], ln2b_ref[...])


# ------------------------------ final projection ------------------------------
def _final_kernel(x_ref, lnw_ref, lnb_ref, wout_ref, out_ref, y_ref):
    # LayerNorm is computed once per batch element (vocab axis is the inner,
    # "arbitrary" grid axis) and cached in VMEM scratch for every vocab tile.
    @pl.when(pl.program_id(1) == 0)
    def _():
        y_ref[...] = _layernorm(x_ref[0], lnw_ref[...], lnb_ref[...])
    out_ref[0] = _mm(y_ref[...], wout_ref[...])


# --------------------------------- wrappers -----------------------------------
def _round_up(x, m):
    return ((x + m - 1) // m) * m


def _full_spec(arr):
    nd = arr.ndim
    return pl.BlockSpec(arr.shape, lambda b, _nd=nd: (0,) * _nd)


def _bsd_spec(S, D):
    return pl.BlockSpec((1, S, D), lambda b: (b, 0, 0))


def layer_forward(x, lp, tq=256):
    """One fused SplatFlow block: splat attention + LN + FF(GELU) + LN."""
    B, S, D = x.shape
    N = lp["gates_scaled"].shape[0]
    tq = S if S <= tq else tq

    pb = lp["pos_bias"]
    if S <= pb.shape[0]:
        posb = pb[:S]
    else:  # reference only adds bias to the first 1024 positions
        posb = jnp.concatenate(
            [pb, jnp.zeros((S - pb.shape[0], pb.shape[1]), pb.dtype)], axis=0)

    args = (x, lp["wpos"], lp["bpos"], posb, lp["spos"], lp["splat_sq"],
            lp["neg_coef"], lp["wqkv"], lp["out_ln_w"], lp["out_ln_b"],
            lp["ln1_w"], lp["ln1_b"], lp["w1"], lp["b1"], lp["w2"], lp["b2"],
            lp["ln2_w"], lp["ln2_b"], lp["gates_scaled"], lp["resw_sig"])
    in_specs = [_bsd_spec(S, D)]
    in_specs += [_full_spec(a) for a in args[1:18]]
    in_specs += [pl.BlockSpec(memory_space=pltpu.MemorySpace.SMEM)] * 2
    # TODO(synk): add a second "parallel" q-tile grid axis so both v7x cores
    # stay busy when B is 1 (would require per-tile recompute of k/v).
    return pl.pallas_call(
        functools.partial(_layer_kernel, N, tq),
        out_shape=jax.ShapeDtypeStruct((B, S, D), jnp.float32),
        grid=(B,),
        in_specs=in_specs,
        out_specs=_bsd_spec(S, D),
        scratch_shapes=[pltpu.VMEM((N, 1, S), jnp.float32),   # influence, row layout
                        pltpu.VMEM((N, S, 1), jnp.float32),   # influence, col layout
                        pltpu.VMEM((S, D), jnp.float32)],     # combined attention out
        compiler_params=_cparams("parallel"),
    )(*args)


def final_forward(x, params, vocab_tile=1024):
    B, S, D = x.shape
    wout = params["wout"]                          # [D, V] f32
    V = wout.shape[1]
    tv = min(vocab_tile, _round_up(V, 128))        # lane-dense, multiple of 128
    Vp = _round_up(V, tv)                          # pad so tiles divide evenly
    if Vp != V:
        wout = jnp.pad(wout, ((0, 0), (0, Vp - V)))
    logits = pl.pallas_call(
        _final_kernel,
        out_shape=jax.ShapeDtypeStruct((B, S, Vp), jnp.float32),
        grid=(B, Vp // tv),
        in_specs=[pl.BlockSpec((1, S, D), lambda b, vi: (b, 0, 0)),
                  pl.BlockSpec((1, D), lambda b, vi: (0, 0)),
                  pl.BlockSpec((1, D), lambda b, vi: (0, 0)),
                  pl.BlockSpec((D, tv), lambda b, vi: (0, vi))],
        out_specs=pl.BlockSpec((1, S, tv), lambda b, vi: (b, 0, vi)),
        scratch_shapes=[pltpu.VMEM((S, D), jnp.float32)],     # cached LN(x)
        compiler_params=_cparams("parallel", "arbitrary"),
    )(x, params["final_ln_w"], params["final_ln_b"], wout)
    return logits[:, :, :V] if Vp != V else logits


def model_forward(input_ids, params):
    B, S = input_ids.shape
    # embedding lookup + position embedding (plain-JAX glue; gather)
    x = jnp.take(params["tok_emb"], input_ids, axis=0) + params["pos_emb"][:S][None]
    # embedding_dropout / FF dropouts: identity at inference
    for lp in params["layers"]:
        x = layer_forward(x, lp)                   # fused splat layer + FF block
    return final_forward(x, params)                # final_norm + output_projection


# ------------------------------ parameter init --------------------------------
def init_params(key, vocab, D, num_layers, max_seq_len):
    E = min(32, D // 4)          # embedding_dim of the splat layer
    N = 8                        # initial_splats
    H = 2 * D                    # FF hidden

    def normal(k, shape, std=0.02):
        return jax.random.normal(k, shape, jnp.float32) * std

    keys = jax.random.split(key, 4 + num_layers)
    params = {
        "tok_emb": normal(keys[0], (vocab, D)),
        "pos_emb": normal(keys[1], (max_seq_len, D)),
        "final_ln_w": jnp.ones((1, D), jnp.float32),
        "final_ln_b": jnp.zeros((1, D), jnp.float32),
        "wout": normal(keys[2], (vocab, D)).T,                 # output_projection^T
        "layers": [],
    }
    inv_sqrt_d = 1.0 / math.sqrt(D)
    for l in range(num_layers):
        lk = jax.random.split(keys[4 + l], 8)
        spos = normal(lk[2], (N, E), std=0.2)
        log_scales = jnp.zeros((N,), jnp.float32)
        scales = jnp.clip(jnp.exp(log_scales), 0.3, 2.0)
        wq = normal(lk[3], (D, D)).T * inv_sqrt_d              # fold 1/sqrt(D) score scale
        wk = normal(lk[4], (D, D)).T
        wv = normal(lk[5], (D, D)).T
        lp = {
            "wpos": normal(lk[0], (E, D)).T,                   # position_encoder.weight^T
            "bpos": jnp.zeros((1, E), jnp.float32),
            "pos_bias": normal(lk[1], (1024, E), std=0.01),
            "spos": spos,
            "splat_sq": jnp.sum(spos * spos, axis=-1, keepdims=True),   # [N, 1] hoisted
            "neg_coef": (-0.5 / (scales * scales))[:, None],            # [N, 1] hoisted
            "wqkv": jnp.concatenate([wq, wk, wv], axis=1),              # [D, 3D] fused
            # sigmoid(gate) / num_splats: folds the mean-over-splats into the gates
            "gates_scaled": jax.nn.sigmoid(jnp.full((N,), 0.5, jnp.float32)) / N,
            "out_ln_w": jnp.ones((1, D), jnp.float32),
            "out_ln_b": jnp.zeros((1, D), jnp.float32),
            "resw_sig": jax.nn.sigmoid(jnp.full((1,), 0.8, jnp.float32)),
            "ln1_w": jnp.ones((1, D), jnp.float32),
            "ln1_b": jnp.zeros((1, D), jnp.float32),
            "ln2_w": jnp.ones((1, D), jnp.float32),
            "ln2_b": jnp.zeros((1, D), jnp.float32),
            "w1": normal(lk[6], (H, D)).T,
            "b1": jnp.zeros((1, H), jnp.float32),
            "w2": normal(lk[7], (D, H)).T,
            "b2": jnp.zeros((1, D), jnp.float32),
        }
        params["layers"].append(lp)
    return params


if __name__ == "__main__":
    VOCAB, D, LAYERS, MAX_SEQ = 64, 32, 2, 16
    B, S = 2, 8

    key = jax.random.PRNGKey(0)
    pkey, ikey = jax.random.split(key)
    params = init_params(pkey, VOCAB, D, LAYERS, MAX_SEQ)
    input_ids = jax.random.randint(ikey, (B, S), 0, VOCAB, dtype=jnp.int32)

    logits = model_forward(input_ids, params)
    logits = jax.block_until_ready(logits)

    assert logits.shape == (B, S, VOCAB), logits.shape
    assert bool(jnp.all(jnp.isfinite(logits)))
    print("KERNEL_OK")
</pallas_src>

<mosaic_0001>
module attributes {stable_mosaic.version = 11 : i64} {
  func.func @_layer_kernel(%arg0: i32, %arg1: memref<1x8x32xf32, #tpu.memory_space<vmem>>, %arg2: memref<32x8xf32, #tpu.memory_space<vmem>>, %arg3: memref<1x8xf32, #tpu.memory_space<vmem>>, %arg4: memref<8x8xf32, #tpu.memory_space<vmem>>, %arg5: memref<8x8xf32, #tpu.memory_space<vmem>>, %arg6: memref<8x1xf32, #tpu.memory_space<vmem>>, %arg7: memref<8x1xf32, #tpu.memory_space<vmem>>, %arg8: memref<32x96xf32, #tpu.memory_space<vmem>>, %arg9: memref<1x32xf32, #tpu.memory_space<vmem>>, %arg10: memref<1x32xf32, #tpu.memory_space<vmem>>, %arg11: memref<1x32xf32, #tpu.memory_space<vmem>>, %arg12: memref<1x32xf32, #tpu.memory_space<vmem>>, %arg13: memref<32x64xf32, #tpu.memory_space<vmem>>, %arg14: memref<1x64xf32, #tpu.memory_space<vmem>>, %arg15: memref<64x32xf32, #tpu.memory_space<vmem>>, %arg16: memref<1x32xf32, #tpu.memory_space<vmem>>, %arg17: memref<1x32xf32, #tpu.memory_space<vmem>>, %arg18: memref<1x32xf32, #tpu.memory_space<vmem>>, %arg19: memref<8xf32, #tpu.memory_space<smem>>, %arg20: memref<1xf32, #tpu.memory_space<smem>>, %arg21: memref<1x8x32xf32, #tpu.memory_space<vmem>>, %arg22: memref<8x1x8xf32, #tpu.memory_space<vmem>>, %arg23: memref<8x8x1xf32, #tpu.memory_space<vmem>>, %arg24: memref<8x32xf32, #tpu.memory_space<vmem>>) attributes {dimension_semantics = [#tpu.dimension_semantics<parallel>], iteration_bounds = array<i64: 2>, scalar_prefetch = 0 : i64, scratch_operands = 3 : i64, tpu.core_type = #tpu.core_type<tc>, window_params = [{transform_indices = @transform_0, window_bounds = array<i64: 1, 8, 32>}, {pipeline_mode = #tpu.pipeline_mode<synchronous>, transform_indices = @transform_1, window_bounds = array<i64: 32, 8>}, {pipeline_mode = #tpu.pipeline_mode<synchronous>, transform_indices = @transform_2, window_bounds = array<i64: 1, 8>}, {pipeline_mode = #tpu.pipeline_mode<synchronous>, transform_indices = @transform_3, window_bounds = array<i64: 8, 8>}, {pipeline_mode = #tpu.pipeline_mode<synchronous>, transform_indices = @transform_4, window_bounds = array<i64: 8, 8>}, {pipeline_mode = #tpu.pipeline_mode<synchronous>, transform_indices = @transform_5, window_bounds = array<i64: 8, 1>}, {pipeline_mode = #tpu.pipeline_mode<synchronous>, transform_indices = @transform_6, window_bounds = array<i64: 8, 1>}, {pipeline_mode = #tpu.pipeline_mode<synchronous>, transform_indices = @transform_7, window_bounds = array<i64: 32, 96>}, {pipeline_mode = #tpu.pipeline_mode<synchronous>, transform_indices = @transform_8, window_bounds = array<i64: 1, 32>}, {pipeline_mode = #tpu.pipeline_mode<synchronous>, transform_indices = @transform_9, window_bounds = array<i64: 1, 32>}, {pipeline_mode = #tpu.pipeline_mode<synchronous>, transform_indices = @transform_10, window_bounds = array<i64: 1, 32>}, {pipeline_mode = #tpu.pipeline_mode<synchronous>, transform_indices = @transform_11, window_bounds = array<i64: 1, 32>}, {pipeline_mode = #tpu.pipeline_mode<synchronous>, transform_indices = @transform_12, window_bounds = array<i64: 32, 64>}, {pipeline_mode = #tpu.pipeline_mode<synchronous>, transform_indices = @transform_13, window_bounds = array<i64: 1, 64>}, {pipeline_mode = #tpu.pipeline_mode<synchronous>, transform_indices = @transform_14, window_bounds = array<i64: 64, 32>}, {pipeline_mode = #tpu.pipeline_mode<synchronous>, transform_indices = @transform_15, window_bounds = array<i64: 1, 32>}, {pipeline_mode = #tpu.pipeline_mode<synchronous>, transform_indices = @transform_16, window_bounds = array<i64: 1, 32>}, {pipeline_mode = #tpu.pipeline_mode<synchronous>, transform_indices = @transform_17, window_bounds = array<i64: 1, 32>}, {transform_indices = @transform_18, window_bounds = array<i64: 8>}, {transform_indices = @transform_19, window_bounds = array<i64: 1>}, {transform_indices = @transform_20, window_bounds = array<i64: 1, 8, 32>}]} {
    %c0 = arith.constant 0 : index
    %c0_0 = arith.constant 0 : index
    %c0_1 = arith.constant 0 : index
    %0 = vector.load %arg1[%c0, %c0_0, %c0_1] : memref<1x8x32xf32, #tpu.memory_space<vmem>>, vector<1x8x32xf32>
    %1 = vector.shape_cast %0 : vector<1x8x32xf32> to vector<8x32xf32>
    %c0_2 = arith.constant 0 : index
    %c0_3 = arith.constant 0 : index
    %2 = vector.load %arg2[%c0_2, %c0_3] : memref<32x8xf32, #tpu.memory_space<vmem>>, vector<32x8xf32>
    %cst = arith.constant dense<0.000000e+00> : vector<8x8xf32>
    %3 = tpu.matmul %1, %2, %cst {dimension_numbers = #tpu.dot_dimension_numbers<[1], [0], [0], [1], [0, 0, 1, 1], [], []>} : vector<8x32xf32>, vector<32x8xf32>, vector<8x8xf32> -> vector<8x8xf32>
    %c0_4 = arith.constant 0 : index
    %c0_5 = arith.constant 0 : index
    %4 = vector.load %arg3[%c0_4, %c0_5] : memref<1x8xf32, #tpu.memory_space<vmem>>, vector<1x8xf32>
    %5 = vector.broadcast %4 : vector<1x8xf32> to vector<8x8xf32>
    %6 = arith.addf %3, %5 : vector<8x8xf32>
    %7 = math.tanh %6 : vector<8x8xf32>
    %c0_6 = arith.constant 0 : index
    %c0_7 = arith.constant 0 : index
    %8 = vector.load %arg4[%c0_6, %c0_7] : memref<8x8xf32, #tpu.memory_space<vmem>>, vector<8x8xf32>
    %9 = arith.addf %7, %8 : vector<8x8xf32>
    %10 = arith.mulf %9, %9 : vector<8x8xf32>
    %cst_8 = arith.constant dense<0.000000e+00> : vector<8xf32>
    %11 = vector.multi_reduction <add>, %10, %cst_8 [1] : vector<8x8xf32> to vector<8xf32>
    %12 = vector.shape_cast %11 : vector<8xf32> to vector<1x8xf32>
    %c0_9 = arith.constant 0 : index
    %c0_10 = arith.constant 0 : index
    %13 = vector.load %arg5[%c0_9, %c0_10] : memref<8x8xf32, #tpu.memory_space<vmem>>, vector<8x8xf32>
    %cst_11 = arith.constant dense<0.000000e+00> : vector<8x8xf32>
    %14 = tpu.matmul %13, %9, %cst_11 {dimension_numbers = #tpu.dot_dimension_numbers<[1], [1], [0], [0], [0, 0, 1, 0], [], []>} : vector<8x8xf32>, vector<8x8xf32>, vector<8x8xf32> -> vector<8x8xf32>
    %c0_12 = arith.constant 0 : index
    %c0_13 = arith.constant 0 : index
    %15 = vector.load %arg6[%c0_12, %c0_13] : memref<8x1xf32, #tpu.memory_space<vmem>>, vector<8x1xf32>
    %16 = vector.broadcast %15 : vector<8x1xf32> to vector<8x8xf32>
    %17 = vector.broadcast %12 : vector<1x8xf32> to vector<8x8xf32>
    %18 = arith.addf %16, %17 : vector<8x8xf32>
    %cst_14 = arith.constant 2.000000e+00 : f32
    %19 = vector.broadcast %cst_14 : f32 to vector<8x8xf32>
    %20 = arith.mulf %19, %14 : vector<8x8xf32>
    %21 = arith.subf %18, %20 : vector<8x8xf32>
    %cst_15 = arith.constant 0.000000e+00 : f32
    %22 = vector.broadcast %cst_15 : f32 to vector<8x8xf32>
    %23 = arith.maximumf %21, %22 : vector<8x8xf32>
    %c0_16 = arith.constant 0 : index
    %c0_17 = arith.constant 0 : index
    %24 = vector.load %arg7[%c0_16, %c0_17] : memref<8x1xf32, #tpu.memory_space<vmem>>, vector<8x1xf32>
    %25 = vector.broadcast %24 : vector<8x1xf32> to vector<8x8xf32>
    %26 = arith.mulf %23, %25 : vector<8x8xf32>
    %27 = math.exp %26 : vector<8x8xf32>
    %cst_18 = arith.constant 0.00999999977 : f32
    %28 = vector.broadcast %cst_18 : f32 to vector<8x8xf32>
    %29 = arith.maximumf %27, %28 : vector<8x8xf32>
    %30 = vector.shape_cast %29 : vector<8x8xf32> to vector<8x1x8xf32>
    %c0_19 = arith.constant 0 : index
    %c0_20 = arith.constant 0 : index
    %c0_21 = arith.constant 0 : index
    %31 = vector.load %arg22[%c0_19, %c0_20, %c0_21] : memref<8x1x8xf32, #tpu.memory_space<vmem>>, vector<8x1x8xf32>
    tpu.vector_store %arg22[%c0_19, %c0_20, %c0_21], %30 {strides = array<i32>} : memref<8x1x8xf32, #tpu.memory_space<vmem>>, vector<8x1x8xf32>,
    %32 = vector.shape_cast %29 : vector<8x8xf32> to vector<8x8x1xf32>
    %c0_22 = arith.constant 0 : index
    %c0_23 = arith.constant 0 : index
    %c0_24 = arith.constant 0 : index
    %33 = vector.load %arg23[%c0_22, %c0_23, %c0_24] : memref<8x8x1xf32, #tpu.memory_space<vmem>>, vector<8x8x1xf32>
    tpu.vector_store %arg23[%c0_22, %c0_23, %c0_24], %32 {strides = array<i32>} : memref<8x8x1xf32, #tpu.memory_space<vmem>>, vector<8x8x1xf32>,
    %c0_25 = arith.constant 0 : index
    %c0_26 = arith.constant 0 : index
    %34 = vector.load %arg8[%c0_25, %c0_26] : memref<32x96xf32, #tpu.memory_space<vmem>>, vector<32x96xf32>
    %cst_27 = arith.constant dense<0.000000e+00> : vector<8x96xf32>
    %35 = tpu.matmul %1, %34, %cst_27 {dimension_numbers = #tpu.dot_dimension_numbers<[1], [0], [0], [1], [0, 0, 1, 1], [], []>} : vector<8x32xf32>, vector<32x96xf32>, vector<8x96xf32> -> vector<8x96xf32>
    %36 = vector.extract_strided_slice %35 {offsets = [0, 0], sizes = [8, 32], strides = [1, 1]} : vector<8x96xf32> to vector<8x32xf32>
    %37 = vector.extract_strided_slice %35 {offsets = [0, 32], sizes = [8, 32], strides = [1, 1]} : vector<8x96xf32> to vector<8x32xf32>
    %38 = vector.extract_strided_slice %35 {offsets = [0, 64], sizes = [8, 32], strides = [1, 1]} : vector<8x96xf32> to vector<8x32xf32>
    %cst_28 = arith.constant dense<0.000000e+00> : vector<8x8xf32>
    %39 = tpu.matmul %36, %37, %cst_28 {dimension_numbers = #tpu.dot_dimension_numbers<[1], [1], [0], [0], [0, 0, 1, 0], [], []>} : vector<8x32xf32>, vector<8x32xf32>, vector<8x8xf32> -> vector<8x8xf32>
    %40 = tpu.iota {dimensions = array<i32: 0>} : vector<8x8xi32>
    %c0_i32 = arith.constant 0 : i32
    %41 = vector.broadcast %c0_i32 : i32 to vector<8x8xi32>
    %42 = arith.addi %41, %40 : vector<8x8xi32>
    %43 = tpu.iota {dimensions = array<i32: 1>} : vector<8x8xi32>
    %44 = arith.cmpi sge, %42, %43 : vector<8x8xi32>
    %cst_29 = arith.constant -1.000000e+09 : f32
    %45 = vector.broadcast %cst_29 : f32 to vector<8x8xf32>
    %46 = arith.select %44, %39, %45 : vector<8x8xi1>, vector<8x8xf32>
    %cst_30 = arith.constant 0.000000e+00 : f32
    %47 = vector.broadcast %cst_30 : f32 to vector<8x8xf32>
    %c0_i32_31 = arith.constant 0 : i32
    %c8_i32 = arith.constant 8 : i32
    %48 = arith.addi %c0_i32_31, %c8_i32 : i32
    %c1_i32 = arith.constant 1 : i32
    %49 = scf.for %arg25 = %c0_i32_31 to %48 step %c1_i32 iter_args(%arg26 = %47) -> (vector<8x8xf32>)  : i32 {
      %187 = arith.index_cast %arg25 : i32 to index
      %c0_97 = arith.constant 0 : index
      %c0_98 = arith.constant 0 : index
      %188 = vector.load %arg22[%187, %c0_97, %c0_98] : memref<8x1x8xf32, #tpu.memory_space<vmem>>, vector<1x1x8xf32>
      %189 = vector.shape_cast %188 : vector<1x1x8xf32> to vector<1x8xf32>
      %190 = arith.index_cast %arg25 : i32 to index
      %c0_99 = arith.constant 0 : index
      %c0_100 = arith.constant 0 : index
      %191 = vector.load %arg23[%190, %c0_99, %c0_100] : memref<8x8x1xf32, #tpu.memory_space<vmem>>, vector<1x8x1xf32>
      %192 = vector.shape_cast %191 : vector<1x8x1xf32> to vector<8x1xf32>
      %193 = vector.broadcast %192 : vector<8x1xf32> to vector<8x8xf32>
      %194 = arith.mulf %46, %193 : vector<8x8xf32>
      %195 = vector.broadcast %189 : vector<1x8xf32> to vector<8x8xf32>
      %196 = arith.mulf %194, %195 : vector<8x8xf32>
      %cst_101 = arith.constant dense<0xFF800000> : vector<8xf32>
      %197 = vector.multi_reduction <maximumf>, %196, %cst_101 [1] : vector<8x8xf32> to vector<8xf32>
      %198 = vector.shape_cast %197 : vector<8xf32> to vector<8x1xf32>
      %199 = vector.broadcast %198 : vector<8x1xf32> to vector<8x8xf32>
      %200 = arith.subf %196, %199 : vector<8x8xf32>
      %201 = math.exp %200 : vector<8x8xf32>
      %cst_102 = arith.constant dense<0.000000e+00> : vector<8xf32>
      %202 = vector.multi_reduction <add>, %201, %cst_102 [1] : vector<8x8xf32> to vector<8xf32>
      %203 = vector.shape_cast %202 : vector<8xf32> to vector<8x1xf32>
      %204 = arith.index_cast %arg25 : i32 to index
      %205 = memref.load %arg19[%204] : memref<8xf32, #tpu.memory_space<smem>>
      %206 = tpu.reciprocal %203 {approx = true} : vector<8x1xf32> -> vector<8x1xf32>
      %207 = vector.broadcast %205 : f32 to vector<8x1xf32>
      %208 = arith.mulf %207, %206 : vector<8x1xf32>
      %209 = vector.broadcast %208 : vector<8x1xf32> to vector<8x8xf32>
      %210 = arith.mulf %209, %201 : vector<8x8xf32>
      %211 = arith.addf %arg26, %210 : vector<8x8xf32>
      scf.yield %211 : vector<8x8xf32>
    }
    %c8_i32_32 = arith.constant 8 : i32
    %cst_33 = arith.constant dense<0.000000e+00> : vector<8x32xf32>
    %50 = tpu.matmul %49, %38, %cst_33 {dimension_numbers = #tpu.dot_dimension_numbers<[1], [0], [0], [1], [0, 0, 1, 1], [], []>} : vector<8x8xf32>, vector<8x32xf32>, vector<8x32xf32> -> vector<8x32xf32>
    %c0_34 = arith.constant 0 : index
    %c0_35 = arith.constant 0 : index
    %51 = vector.load %arg24[%c0_34, %c0_35] : memref<8x32xf32, #tpu.memory_space<vmem>>, vector<8x32xf32>
    tpu.vector_store %arg24[%c0_34, %c0_35], %50 {strides = array<i32>} : memref<8x32xf32, #tpu.memory_space<vmem>>, vector<8x32xf32>,
    %c0_36 = arith.constant 0 : index
    %c0_37 = arith.constant 0 : index
    %52 = vector.load %arg24[%c0_36, %c0_37] : memref<8x32xf32, #tpu.memory_space<vmem>>, vector<8x32xf32>
    %c0_38 = arith.constant 0 : index
    %53 = memref.load %arg20[%c0_38] : memref<1xf32, #tpu.memory_space<smem>>
    %54 = vector.broadcast %53 : f32 to vector<8x32xf32>
    %55 = arith.mulf %54, %1 : vector<8x32xf32>
    %cst_39 = arith.constant 1.000000e+00 : f32
    %56 = arith.subf %cst_39, %53 : f32
    %57 = vector.broadcast %56 : f32 to vector<8x32xf32>
    %58 = arith.mulf %57, %52 : vector<8x32xf32>
    %59 = arith.addf %55, %58 : vector<8x32xf32>
    %c0_40 = arith.constant 0 : index
    %c0_41 = arith.constant 0 : index
    %60 = vector.load %arg9[%c0_40, %c0_41] : memref<1x32xf32, #tpu.memory_space<vmem>>, vector<1x32xf32>
    %c0_42 = arith.constant 0 : index
    %c0_43 = arith.constant 0 : index
    %61 = vector.load %arg10[%c0_42, %c0_43] : memref<1x32xf32, #tpu.memory_space<vmem>>, vector<1x32xf32>
    %cst_44 = arith.constant dense<0.000000e+00> : vector<8xf32>
    %62 = vector.multi_reduction <add>, %59, %cst_44 [1] : vector<8x32xf32> to vector<8xf32>
    %63 = vector.shape_cast %62 : vector<8xf32> to vector<8x1xf32>
    %cst_45 = arith.constant 3.200000e+01 : f32
    %64 = vector.broadcast %cst_45 : f32 to vector<8x1xf32>
    %65 = arith.divf %63, %64 : vector<8x1xf32>
    %66 = vector.broadcast %65 : vector<8x1xf32> to vector<8x32xf32>
    %67 = arith.subf %59, %66 : vector<8x32xf32>
    %68 = arith.mulf %67, %67 : vector<8x32xf32>
    %cst_46 = arith.constant dense<0.000000e+00> : vector<8xf32>
    %69 = vector.multi_reduction <add>, %68, %cst_46 [1] : vector<8x32xf32> to vector<8xf32>
    %70 = vector.shape_cast %69 : vector<8xf32> to vector<8x1xf32>
    %cst_47 = arith.constant 3.200000e+01 : f32
    %71 = vector.broadcast %cst_47 : f32 to vector<8x1xf32>
    %72 = arith.divf %70, %71 : vector<8x1xf32>
    %cst_48 = arith.constant 9.99999974E-6 : f32
    %73 = vector.broadcast %cst_48 : f32 to vector<8x1xf32>
    %74 = arith.addf %72, %73 : vector<8x1xf32>
    %75 = math.rsqrt %74 : vector<8x1xf32>
    %76 = vector.broadcast %75 : vector<8x1xf32> to vector<8x32xf32>
    %77 = arith.mulf %67, %76 : vector<8x32xf32>
    %78 = vector.broadcast %60 : vector<1x32xf32> to vector<8x32xf32>
    %79 = arith.mulf %77, %78 : vector<8x32xf32>
    %80 = vector.broadcast %61 : vector<1x32xf32> to vector<8x32xf32>
    %81 = arith.addf %79, %80 : vector<8x32xf32>
    %82 = arith.addf %1, %81 : vector<8x32xf32>
    %c0_49 = arith.constant 0 : index
    %c0_50 = arith.constant 0 : index
    %83 = vector.load %arg11[%c0_49, %c0_50] : memref<1x32xf32, #tpu.memory_space<vmem>>, vector<1x32xf32>
    %c0_51 = arith.constant 0 : index
    %c0_52 = arith.constant 0 : index
    %84 = vector.load %arg12[%c0_51, %c0_52] : memref<1x32xf32, #tpu.memory_space<vmem>>, vector<1x32xf32>
    %cst_53 = arith.constant dense<0.000000e+00> : vector<8xf32>
    %85 = vector.multi_reduction <add>, %82, %cst_53 [1] : vector<8x32xf32> to vector<8xf32>
    %86 = vector.shape_cast %85 : vector<8xf32> to vector<8x1xf32>
    %cst_54 = arith.constant 3.200000e+01 : f32
    %87 = vector.broadcast %cst_54 : f32 to vector<8x1xf32>
    %88 = arith.divf %86, %87 : vector<8x1xf32>
    %89 = vector.broadcast %88 : vector<8x1xf32> to vector<8x32xf32>
    %90 = arith.subf %82, %89 : vector<8x32xf32>
    %91 = arith.mulf %90, %90 : vector<8x32xf32>
    %cst_55 = arith.constant dense<0.000000e+00> : vector<8xf32>
    %92 = vector.multi_reduction <add>, %91, %cst_55 [1] : vector<8x32xf32> to vector<8xf32>
    %93 = vector.shape_cast %92 : vector<8xf32> to vector<8x1xf32>
    %cst_56 = arith.constant 3.200000e+01 : f32
    %94 = vector.broadcast %cst_56 : f32 to vector<8x1xf32>
    %95 = arith.divf %93, %94 : vector<8x1xf32>
    %cst_57 = arith.constant 9.99999974E-6 : f32
    %96 = vector.broadcast %cst_57 : f32 to vector<8x1xf32>
    %97 = arith.addf %95, %96 : vector<8x1xf32>
    %98 = math.rsqrt %97 : vector<8x1xf32>
    %99 = vector.broadcast %98 : vector<8x1xf32> to vector<8x32xf32>
    %100 = arith.mulf %90, %99 : vector<8x32xf32>
    %101 = vector.broadcast %83 : vector<1x32xf32> to vector<8x32xf32>
    %102 = arith.mulf %100, %101 : vector<8x32xf32>
    %103 = vector.broadcast %84 : vector<1x32xf32> to vector<8x32xf32>
    %104 = arith.addf %102, %103 : vector<8x32xf32>
    %c0_58 = arith.constant 0 : index
    %c0_59 = arith.constant 0 : index
    %105 = vector.load %arg13[%c0_58, %c0_59] : memref<32x64xf32, #tpu.memory_space<vmem>>, vector<32x64xf32>
    %cst_60 = arith.constant dense<0.000000e+00> : vector<8x64xf32>
    %106 = tpu.matmul %104, %105, %cst_60 {dimension_numbers = #tpu.dot_dimension_numbers<[1], [0], [0], [1], [0, 0, 1, 1], [], []>} : vector<8x32xf32>, vector<32x64xf32>, vector<8x64xf32> -> vector<8x64xf32>
    %c0_61 = arith.constant 0 : index
    %c0_62 = arith.constant 0 : index
    %107 = vector.load %arg14[%c0_61, %c0_62] : memref<1x64xf32, #tpu.memory_space<vmem>>, vector<1x64xf32>
    %108 = vector.broadcast %107 : vector<1x64xf32> to vector<8x64xf32>
    %109 = arith.addf %106, %108 : vector<8x64xf32>
    %cst_63 = arith.constant 0.707106769 : f32
    %110 = vector.broadcast %cst_63 : f32 to vector<8x64xf32>
    %111 = arith.mulf %109, %110 : vector<8x64xf32>
    %cst_64 = arith.constant -4.000000e+00 : f32
    %cst_65 = arith.constant 4.000000e+00 : f32
    %112 = vector.broadcast %cst_64 : f32 to vector<8x64xf32>
    %113 = arith.maximumf %112, %111 : vector<8x64xf32>
    %114 = vector.broadcast %cst_65 : f32 to vector<8x64xf32>
    %115 = arith.minimumf %114, %113 : vector<8x64xf32>
    %116 = arith.mulf %115, %115 : vector<8x64xf32>
    %cst_66 = arith.constant 2.29050653E-4 : f32
    %117 = vector.broadcast %cst_66 : f32 to vector<8x64xf32>
    %118 = arith.mulf %117, %116 : vector<8x64xf32>
    %cst_67 = arith.constant 0.00340829091 : f32
    %119 = vector.broadcast %cst_67 : f32 to vector<8x64xf32>
    %120 = arith.addf %118, %119 : vector<8x64xf32>
    %121 = arith.mulf %120, %116 : vector<8x64xf32>
    %cst_68 = arith.constant 0.0509556942 : f32
    %122 = vector.broadcast %cst_68 : f32 to vector<8x64xf32>
    %123 = arith.addf %121, %122 : vector<8x64xf32>
    %124 = arith.mulf %123, %116 : vector<8x64xf32>
    %cst_69 = arith.constant 0.185208321 : f32
    %125 = vector.broadcast %cst_69 : f32 to vector<8x64xf32>
    %126 = arith.addf %124, %125 : vector<8x64xf32>
    %127 = arith.mulf %126, %116 : vector<8x64xf32>
    %cst_70 = arith.constant 1.12837911 : f32
    %128 = vector.broadcast %cst_70 : f32 to vector<8x64xf32>
    %129 = arith.addf %127, %128 : vector<8x64xf32>
    %cst_71 = arith.constant -1.17916031E-7 : f32
    %130 = vector.broadcast %cst_71 : f32 to vector<8x64xf32>
    %131 = arith.mulf %130, %116 : vector<8x64xf32>
    %cst_72 = arith.constant 2.35479656E-5 : f32
    %132 = vector.broadcast %cst_72 : f32 to vector<8x64xf32>
    %133 = arith.addf %131, %132 : vector<8x64xf32>
    %134 = arith.mulf %133, %116 : vector<8x64xf32>
    %cst_73 = arith.constant 0.00101796258 : f32
    %135 = vector.broadcast %cst_73 : f32 to vector<8x64xf32>
    %136 = arith.addf %134, %135 : vector<8x64xf32>
    %137 = arith.mulf %136, %116 : vector<8x64xf32>
    %cst_74 = arith.constant 0.0140704699 : f32
    %138 = vector.broadcast %cst_74 : f32 to vector<8x64xf32>
    %139 = arith.addf %137, %138 : vector<8x64xf32>
    %140 = arith.mulf %139, %116 : vector<8x64xf32>
    %cst_75 = arith.constant 0.110985048 : f32
    %141 = vector.broadcast %cst_75 : f32 to vector<8x64xf32>
    %142 = arith.addf %140, %141 : vector<8x64xf32>
    %143 = arith.mulf %142, %116 : vector<8x64xf32>
    %cst_76 = arith.constant 0.497469246 : f32
    %144 = vector.broadcast %cst_76 : f32 to vector<8x64xf32>
    %145 = arith.addf %143, %144 : vector<8x64xf32>
    %146 = arith.mulf %145, %116 : vector<8x64xf32>
    %cst_77 = arith.constant 1.000000e+00 : f32
    %147 = vector.broadcast %cst_77 : f32 to vector<8x64xf32>
    %148 = arith.addf %146, %147 : vector<8x64xf32>
    %149 = arith.mulf %115, %129 : vector<8x64xf32>
    %150 = arith.divf %149, %148 : vector<8x64xf32>
    %cst_78 = arith.constant 5.000000e-01 : f32
    %151 = vector.broadcast %cst_78 : f32 to vector<8x64xf32>
    %152 = arith.mulf %151, %109 : vector<8x64xf32>
    %cst_79 = arith.constant 1.000000e+00 : f32
    %153 = vector.broadcast %cst_79 : f32 to vector<8x64xf32>
    %154 = arith.addf %153, %150 : vector<8x64xf32>
    %155 = arith.mulf %152, %154 : vector<8x64xf32>
    %c0_80 = arith.constant 0 : index
    %c0_81 = arith.constant 0 : index
    %156 = vector.load %arg15[%c0_80, %c0_81] : memref<64x32xf32, #tpu.memory_space<vmem>>, vector<64x32xf32>
    %cst_82 = arith.constant dense<0.000000e+00> : vector<8x32xf32>
    %157 = tpu.matmul %155, %156, %cst_82 {dimension_numbers = #tpu.dot_dimension_numbers<[1], [0], [0], [1], [0, 0, 1, 1], [], []>} : vector<8x64xf32>, vector<64x32xf32>, vector<8x32xf32> -> vector<8x32xf32>
    %c0_83 = arith.constant 0 : index
    %c0_84 = arith.constant 0 : index
    %158 = vector.load %arg16[%c0_83, %c0_84] : memref<1x32xf32, #tpu.memory_space<vmem>>, vector<1x32xf32>
    %159 = vector.broadcast %158 : vector<1x32xf32> to vector<8x32xf32>
    %160 = arith.addf %157, %159 : vector<8x32xf32>
    %161 = arith.addf %104, %160 : vector<8x32xf32>
    %c0_85 = arith.constant 0 : index
    %c0_86 = arith.constant 0 : index
    %162 = vector.load %arg17[%c0_85, %c0_86] : memref<1x32xf32, #tpu.memory_space<vmem>>, vector<1x32xf32>
    %c0_87 = arith.constant 0 : index
    %c0_88 = arith.constant 0 : index
    %163 = vector.load %arg18[%c0_87, %c0_88] : memref<1x32xf32, #tpu.memory_space<vmem>>, vector<1x32xf32>
    %cst_89 = arith.constant dense<0.000000e+00> : vector<8xf32>
    %164 = vector.multi_reduction <add>, %161, %cst_89 [1] : vector<8x32xf32> to vector<8xf32>
    %165 = vector.shape_cast %164 : vector<8xf32> to vector<8x1xf32>
    %cst_90 = arith.constant 3.200000e+01 : f32
    %166 = vector.broadcast %cst_90 : f32 to vector<8x1xf32>
    %167 = arith.divf %165, %166 : vector<8x1xf32>
    %168 = vector.broadcast %167 : vector<8x1xf32> to vector<8x32xf32>
    %169 = arith.subf %161, %168 : vector<8x32xf32>
    %170 = arith.mulf %169, %169 : vector<8x32xf32>
    %cst_91 = arith.constant dense<0.000000e+00> : vector<8xf32>
    %171 = vector.multi_reduction <add>, %170, %cst_91 [1] : vector<8x32xf32> to vector<8xf32>
    %172 = vector.shape_cast %171 : vector<8xf32> to vector<8x1xf32>
    %cst_92 = arith.constant 3.200000e+01 : f32
    %173 = vector.broadcast %cst_92 : f32 to vector<8x1xf32>
    %174 = arith.divf %172, %173 : vector<8x1xf32>
    %cst_93 = arith.constant 9.99999974E-6 : f32
    %175 = vector.broadcast %cst_93 : f32 to vector<8x1xf32>
    %176 = arith.addf %174, %175 : vector<8x1xf32>
    %177 = math.rsqrt %176 : vector<8x1xf32>
    %178 = vector.broadcast %177 : vector<8x1xf32> to vector<8x32xf32>
    %179 = arith.mulf %169, %178 : vector<8x32xf32>
    %180 = vector.broadcast %162 : vector<1x32xf32> to vector<8x32xf32>
    %181 = arith.mulf %179, %180 : vector<8x32xf32>
    %182 = vector.broadcast %163 : vector<1x32xf32> to vector<8x32xf32>
    %183 = arith.addf %181, %182 : vector<8x32xf32>
    %c0_94 = arith.constant 0 : index
    %c0_95 = arith.constant 0 : index
    %c0_96 = arith.constant 0 : index
    %184 = vector.load %arg21[%c0_94, %c0_95, %c0_96] : memref<1x8x32xf32, #tpu.memory_space<vmem>>, vector<1x8x32xf32>
    %185 = vector.shape_cast %184 : vector<1x8x32xf32> to vector<8x32xf32>
    %186 = vector.shape_cast %183 : vector<8x32xf32> to vector<1x8x32xf32>
    tpu.vector_store %arg21[%c0_94, %c0_95, %c0_96], %186 {strides = array<i32>} : memref<1x8x32xf32, #tpu.memory_space<vmem>>, vector<1x8x32xf32>,
    return
  }
  func.func @transform_0(%arg0: i32) -> (i32, i32, i32) {
    %c0_i32 = arith.constant 0 : i32
    %c0_i32_0 = arith.constant 0 : i32
    %c0_i32_1 = arith.constant 0 : i32
    return %arg0, %c0_i32, %c0_i32_0 : i32, i32, i32
  }
  func.func @transform_1(%arg0: i32) -> (i32, i32) {
    %c0_i32 = arith.constant 0 : i32
    %c0_i32_0 = arith.constant 0 : i32
    %c0_i32_1 = arith.constant 0 : i32
    return %c0_i32, %c0_i32_0 : i32, i32
  }
  func.func @transform_2(%arg0: i32) -> (i32, i32) {
    %c0_i32 = arith.constant 0 : i32
    %c0_i32_0 = arith.constant 0 : i32
    %c0_i32_1 = arith.constant 0 : i32
    return %c0_i32, %c0_i32_0 : i32, i32
  }
  func.func @transform_3(%arg0: i32) -> (i32, i32) {
    %c0_i32 = arith.constant 0 : i32
    %c0_i32_0 = arith.constant 0 : i32
    %c0_i32_1 = arith.constant 0 : i32
    return %c0_i32, %c0_i32_0 : i32, i32
  }
  func.func @transform_4(%arg0: i32) -> (i32, i32) {
    %c0_i32 = arith.constant 0 : i32
    %c0_i32_0 = arith.constant 0 : i32
    %c0_i32_1 = arith.constant 0 : i32
    return %c0_i32, %c0_i32_0 : i32, i32
  }
  func.func @transform_5(%arg0: i32) -> (i32, i32) {
    %c0_i32 = arith.constant 0 : i32
    %c0_i32_0 = arith.constant 0 : i32
    %c0_i32_1 = arith.constant 0 : i32
    return %c0_i32, %c0_i32_0 : i32, i32
  }
  func.func @transform_6(%arg0: i32) -> (i32, i32) {
    %c0_i32 = arith.constant 0 : i32
    %c0_i32_0 = arith.constant 0 : i32
    %c0_i32_1 = arith.constant 0 : i32
    return %c0_i32, %c0_i32_0 : i32, i32
  }
  func.func @transform_7(%arg0: i32) -> (i32, i32) {
    %c0_i32 = arith.constant 0 : i32
    %c0_i32_0 = arith.constant 0 : i32
    %c0_i32_1 = arith.constant 0 : i32
    return %c0_i32, %c0_i32_0 : i32, i32
  }
  func.func @transform_8(%arg0: i32) -> (i32, i32) {
    %c0_i32 = arith.constant 0 : i32
    %c0_i32_0 = arith.constant 0 : i32
    %c0_i32_1 = arith.constant 0 : i32
    return %c0_i32, %c0_i32_0 : i32, i32
  }
  func.func @transform_9(%arg0: i32) -> (i32, i32) {
    %c0_i32 = arith.constant 0 : i32
    %c0_i32_0 = arith.constant 0 : i32
    %c0_i32_1 = arith.constant 0 : i32
    return %c0_i32, %c0_i32_0 : i32, i32
  }
  func.func @transform_10(%arg0: i32) -> (i32, i32) {
    %c0_i32 = arith.constant 0 : i32
    %c0_i32_0 = arith.constant 0 : i32
    %c0_i32_1 = arith.constant 0 : i32
    return %c0_i32, %c0_i32_0 : i32, i32
  }
  func.func @transform_11(%arg0: i32) -> (i32, i32) {
    %c0_i32 = arith.constant 0 : i32
    %c0_i32_0 = arith.constant 0 : i32
    %c0_i32_1 = arith.constant 0 : i32
    return %c0_i32, %c0_i32_0 : i32, i32
  }
  func.func @transform_12(%arg0: i32) -> (i32, i32) {
    %c0_i32 = arith.constant 0 : i32
    %c0_i32_0 = arith.constant 0 : i32
    %c0_i32_1 = arith.constant 0 : i32
    return %c0_i32, %c0_i32_0 : i32, i32
  }
  func.func @transform_13(%arg0: i32) -> (i32, i32) {
    %c0_i32 = arith.constant 0 : i32
    %c0_i32_0 = arith.constant 0 : i32
    %c0_i32_1 = arith.constant 0 : i32
    return %c0_i32, %c0_i32_0 : i32, i32
  }
  func.func @transform_14(%arg0: i32) -> (i32, i32) {
    %c0_i32 = arith.constant 0 : i32
    %c0_i32_0 = arith.constant 0 : i32
    %c0_i32_1 = arith.constant 0 : i32
    return %c0_i32, %c0_i32_0 : i32, i32
  }
  func.func @transform_15(%arg0: i32) -> (i32, i32) {
    %c0_i32 = arith.constant 0 : i32
    %c0_i32_0 = arith.constant 0 : i32
    %c0_i32_1 = arith.constant 0 : i32
    return %c0_i32, %c0_i32_0 : i32, i32
  }
  func.func @transform_16(%arg0: i32) -> (i32, i32) {
    %c0_i32 = arith.constant 0 : i32
    %c0_i32_0 = arith.constant 0 : i32
    %c0_i32_1 = arith.constant 0 : i32
    return %c0_i32, %c0_i32_0 : i32, i32
  }
  func.func @transform_17(%arg0: i32) -> (i32, i32) {
    %c0_i32 = arith.constant 0 : i32
    %c0_i32_0 = arith.constant 0 : i32
    %c0_i32_1 = arith.constant 0 : i32
    return %c0_i32, %c0_i32_0 : i32, i32
  }
  func.func @transform_18(%arg0: i32) -> i32 {
    %c0_i32 = arith.constant 0 : i32
    %c0_i32_0 = arith.constant 0 : i32
    return %c0_i32 : i32
  }
  func.func @transform_19(%arg0: i32) -> i32 {
    %c0_i32 = arith.constant 0 : i32
    %c0_i32_0 = arith.constant 0 : i32
    return %c0_i32 : i32
  }
  func.func @transform_20(%arg0: i32) -> (i32, i32, i32) {
    %c0_i32 = arith.constant 0 : i32
    %c0_i32_0 = arith.constant 0 : i32
    %c0_i32_1 = arith.constant 0 : i32
    return %arg0, %c0_i32, %c0_i32_0 : i32, i32, i32
  }
}

</mosaic_0001>

<bundles_post_ra>
// kernel: tpu_custom_call.1
= control target key start
LH: loop header
LB: loop body
LE: loop exit
PB: predicated region body
PF: predicated region fallthrough
CT: control target
= control target key end

     0   :  { %s1883_s0 = inlined_call_operand.vmem [shape: f32[2,8,32], index: 0, kind: input, shape index: {}]   ;;  %s1884_s1 = inlined_call_operand.vmem [shape: f32[32,8], index: 1, kind: input, shape index: {}]   ;;  %s1885_s2 = inlined_call_operand.vmem [shape: f32[1,8], index: 2, kind: input, shape index: {}]   ;;  %s1886_s3 = inlined_call_operand.vmem [shape: f32[8,8], index: 3, kind: input, shape index: {}]   ;;  %s1887_s4 = inlined_call_operand.vmem [shape: f32[8,8], index: 4, kind: input, shape index: {}]   ;;  %s1888_s5 = inlined_call_operand.vmem [shape: f32[8,1], index: 5, kind: input, shape index: {}]   ;;  %s1889_s6 = inlined_call_operand.vmem [shape: f32[8,1], index: 6, kind: input, shape index: {}]   ;;  %s1890_s7 = inlined_call_operand.vmem [shape: f32[32,96], index: 7, kind: input, shape index: {}]   ;;  %s1891_s8 = inlined_call_operand.vmem [shape: f32[1,32], index: 8, kind: input, shape index: {}]   ;;  %s1892_s9 = inlined_call_operand.vmem [shape: f32[1,32], index: 9, kind: input, shape index: {}]   ;;  %s1893_s10 = inlined_call_operand.vmem [shape: f32[1,32], index: 10, kind: input, shape index: {}]   ;;  %s1894_s11 = inlined_call_operand.vmem [shape: f32[1,32], index: 11, kind: input, shape index: {}]   ;;  %s1895_s12 = inlined_call_operand.vmem [shape: f32[32,64], index: 12, kind: input, shape index: {}]   ;;  %s1896_s13 = inlined_call_operand.vmem [shape: f32[1,64], index: 13, kind: input, shape index: {}]   ;;  %s1897_s14 = inlined_call_operand.vmem [shape: f32[64,32], index: 14, kind: input, shape index: {}]   ;;  %s1898_s15 = inlined_call_operand.vmem [shape: f32[1,32], index: 15, kind: input, shape index: {}]   ;;  %s1899_s16 = inlined_call_operand.vmem [shape: f32[1,32], index: 16, kind: input, shape index: {}]   ;;  %s1900_s17 = inlined_call_operand.vmem [shape: f32[1,32], index: 17, kind: input, shape index: {}]   ;;  %s1901_s18 = inlined_call_operand.vmem [shape: f32[8], index: 18, kind: input, shape index: {}]   ;;  %s1902_s19 = inlined_call_operand.<no memory space> [shape: f32[1], index: 19, kind: input, shape index: {}]   ;;  %s1903_s20 = inlined_call_operand.hbm [shape: f32[2,8,32], index: 20, kind: output, shape index: {}]  }
   0x1   :  { %1912 = sst [smem:[#allocation18_spill]] %s1883_s0 }
   0x2   :  { %1913 = sst [smem:[#allocation19_spill]] %s1884_s1 }
   0x3   :  { %1914 = sst [smem:[#allocation20_spill]] %s1885_s2 }
   0x4   :  { %1915 = sst [smem:[#allocation21_spill]] %s1886_s3 }
   0x5   :  { %1916 = sst [smem:[#allocation22_spill]] %s1887_s4 }
   0x6   :  { %1917 = sst [smem:[#allocation23_spill]] %s1901_s18 }
   0x7   :  { %25 = sst [smem:[#allocation5]] %s1902_s19 }
   0x8   :  { %26 = vsyncpa [#allocation8], 0 }
   0x9   :  { %27 = vsyncpa [#allocation7], 0 }
   0xa   :  { %29 = vsyncpa [#allocation7 + $0x1], 0  ;;  %s1615_s23 = smov 0   ;;  %s1617_s24 = smov 0  }
   0xb   :  { %s1619_s2 = smov 0   ;;  %s1621_s25 = smov 0  }
   0xc LB: > { %1918 = sst [smem:[#allocation12_spill]] %s1479_s23  ;;  %s1636_s19 = sadd.s32 4294967295, %s1491_s25   ;;  %s1491_s25 = sphi %s1621_s25, %s1936_s25   ;;  %s1487_s2 = sphi %s1619_s2, %s1938_s2   ;;  %s1483_s24 = sphi %s1617_s24, %s1940_s24   ;;  %s1479_s23 = sphi %s1615_s23, %s1939_s23  }
   0xd   : > { %1919 = sst [smem:[#allocation13_spill]] %s1487_s2  ;;  %s1275_s3 = sadd.s32 4294967294, %s1491_s25  }
   0xe   : > { %1920 = sst [smem:[#allocation14_spill]] %s1491_s25  ;;  %s1640_s26 = sadd.s32 1, %s1491_s25  }
   0xf   : > { %1921 = sst [smem:[#allocation15_spill]] %s1640_s26  ;;  %s467_s27 = sadd.s32 1, %s1487_s2 }
  0x10   : > { %s464_s28 = ssub.s32 %s1491_s25, %s1640_s26  ;;  %p477_p0 = scmp.ne.s32.totalorder %s1487_s2, %s1483_s24 }
  0x11   : > { %p465_p1 = scmp.eq.s32.totalorder %s464_s28, 0  ;;  %p478_p2 = scmp.eq.s32.totalorder %s1636_s19, 1 }
  0x12   : > { %p483_p3 = scmp.ne.s32.totalorder %s1483_s24, %s1479_s23  ;;  %p484_p4 = scmp.eq.s32.totalorder %s1275_s3, 1 }
  0x13   : > { %s1651_s4 = scalar_select %p465_p1, %s1487_s2, %s467_s27  }
  0x14   : > { %p1653_p5 = por %p478_p2, %p477_p0  ;;  %p1657_p6 = por %p484_p4, %p483_p3 }
  0x15   : > { %1922 = sst [smem:[#allocation16_spill]] %s1651_s4  ;;  %p1276_p7 = scmp.ge.s32.totalorder %s1491_s25, 1 }
  0x16   : > { %s1924_s30 = scalar_select %p1657_p6, 1, 0 }
  0x17   : > { %p491_p8 = scmp.lt.s32.totalorder %s1491_s25, 3  ;;  %p1312_p9 = scmp.eq.s32.totalorder %s1636_s19, 0 }
  0x18   : > { %1925 = sst [smem:[#allocation17_spill]] %s1924_s30  ;;  %s1501_s22 = smov [#allocation6]  }
  0x19   : > { %p492_p10 = pnand %p1276_p7, %p491_p8  ;;  %s1926_s18 = sld [smem:[#allocation23_spill]] }
  0x1b   : > { %p1304_p11 = pneg %p492_p10 }
  0x1c   : > { %577 = sbr.rel (%p492_p10) target bundleno = 2152 (0x868), region = 100 }
  0x1d   : > { %p1305_p12 = pnand %p1312_p9, %p1304_p11 }
  0x1f   : > { %s554_s1 = sshll.u32 %s1926_s18, 4  ;;  %s555_s1 = int_to_ptr.vmem [resolvable:$true] %s554_s1 }
  0x20   : > { %1307 = dma.vmem_to_smem (!%p1305_p12), %s555_s1, 16, %s1501_s22, [#allocation8]  }
  0x21   : > { %1470 = dma.done.wait (%p1312_p9), [#allocation8], 16  }
  0x22   : > { %1472 = vsyncadd (%p1312_p9), [#allocation8], 4294967280 }
  0x23   : > { %584 = sfence }
  0x24   : > { %s1910_s3 = sand.u32 1, %s1483_s24   ;;  %s1927_s4 = sld [smem:[#allocation19_spill]]  ;;  %vm649_vm0 = vcmask 261120   ;;  %v837_v4 = vld [vmem:[%s1890_s7 + $0x18] sm:$0xff]  ;;  %v836_v6 = vld [vmem:[%s1890_s7 + $0x10] sm:$0xff]  ;;  %v835_v7 = vld [vmem:[%s1890_s7 + $0x8] sm:$0xff]  ;;  %v715_v22 = vlaneseq }
  0x25   : > { %p636_p13 = scmp.lt.s32.totalorder %s1636_s19, 1  ;;  %s1677_s1 = sshll.u32 %s1910_s3, 3  ;;  %v834_v8 = vld [vmem:[%s1890_s7] sm:$0xff]  ;;  %v1502_v9 = vmov 0   ;;  %vm677_vm1 = vcmask 64512   ;;  %vm760_vm2 = vcmask 57344  }
  0x26   : > { %s1928_s21 = sld [smem:[#allocation18_spill]]  ;;  %1369 = vset.pattern.permute.xlu1 %v1502_v9  ;;  %v708_v10 = vld [vmem:[%s1888_s5] sm:$0xff]  ;;  %v771_v23 = vshrl.u32 %v715_v22, 7  ;;  %v716_v25 = vand.u32 127, %v715_v22  ;;  %vm825_vm4 = vcmask 7168   ;;  %s635_s3 = scalar_lea.vmem [#allocation9], %s1677_s1 }
  0x27   : > { %s637_s2 = scalar_select %p636_p13, %s1636_s19, 1  ;;  %711 = vperm.xlu1 %1369, %v708_v10   ;;  %v735_v19 = vld [vmem:[%s1889_s6] sm:$0xff] }
  0x28   : > { %s1929_s0 = sld [smem:[#allocation20_spill]]  ;;  %1370 = vset.pattern.permute.xlu2 %v771_v23  ;;  %1372 = vset.pattern.permute.xlu0 %v771_v23  ;;  %vm887_vm3 = vcmp.ge.s32.totalorder %v771_v23, %v716_v25  ;;  %s1748_s28 = smov 0  }
  0x29   : > { %s1282_s27 = sshll.u32 %s637_s2, 3  ;;  %s1930_s26 = sld [smem:[#allocation21_spill]] }
  0x2a   : > { %v644_v0 = vld [vmem:[%s1927_s4 + $0x18] sm:$0xff]  ;;  %v643_v1 = vld [vmem:[%s1927_s4 + $0x10] sm:$0xff]  ;;  %v642_v2 = vld [vmem:[%s1927_s4 + $0x8] sm:$0xff]  ;;  %s1503_s2 = smov 96  }
  0x2b   : > { %665 = vmatpush.msra.mxu2 %v644_v0  ;;  %v641_v3 = vld [vmem:[%s1927_s4] sm:$0xff]  ;;  %v1493_v0 = vmov 0.0  }
  0x2c   : > { %s639_s23 = scalar_lea.vmem %s1928_s21, %s1282_s27  ;;  %s1931_s27 = sld [smem:[#allocation22_spill]] }
  0x2d   : > { %666 = vmatpush.msra.mxu2 %v643_v1  ;;  %v1692_v5 = vld [vmem:[%s639_s23] sm:$0xff] }
  0x2e   : > { %v1373_v11 = vld [vmem:[%s1929_s0] ss:$0 sm:$0xff] }
  0x2f   : > { %667 = vmatpush.msra.mxu2 %v642_v2  ;;  %v674_v14 = vld [vmem:[%s1930_s26] sm:$0xff]  ;;  %738 = vperm.xlu1 %1369, %v735_v19  }
  0x31   : > { %668 = vmatpush.msra.mxu2 %v641_v3 }
  0x32   : > { %1283 = vmatmul.msk.f32.vlgmr.msra.gmra.mxu2 %vm649_vm0, %v1692_v5  ;;  %v681_v18 = vld [vmem:[%s1931_s27] sm:$0xff] }
  0x33   : > { %850 = vmatpush.msrb.mxu2 %v837_v4 }
  0x35   : > { %851 = vmatpush.msrb.mxu2 %v836_v6 }
  0x37   : > { %852 = vmatpush.msrb.mxu2 %v835_v7  ;;  %1371 = vset.pattern.permute.xlu1 %v771_v23 }
  0x39   : > { %853 = vmatpush.msrb.mxu2 %v834_v8 }
  0x3a   : > { %1286 = vmatmul.msk.f32.vlgmr.msrb.gmra.mxu2 %vm649_vm0, %v1692_v5 }
  0x99   : > { %v712_v26 = vpop.permute.xlu1 %711 }
  0xa1   : > { %v739_v34 = vpop.permute.xlu1 %738 }
  0xb5   : > { %v670_v12 = vpop.f32.mrf.mxu2 }
  0xb6   : > { %v671_v13 = vadd.f32 %v1373_v11, %v670_v12 }
  0xb8   : > { %1374 = vtanh.f32 %v671_v13 }
  0xbd   : > { %v1716_v15 = vpop.f32.mrf.mxu2 }
  0xbe   : > { %v1375_v16 = vpop.eup %1374  ;;  %859 = vrot.lane.b32.xlu0 %v1716_v15, %s1503_s2 }
  0xbf   : > { %v675_v17 = vadd.f32 %v1375_v16, %v674_v14 }
  0xc1   : > { %1284 = vmatpush.xpose.msk.msra.mxu1 %vm677_vm1, %v675_v17  ;;  %v676_v20 = vmul.f32 %v675_v17, %v675_v17 }
  0xc3   : > { %v678_v21 = vsel %vm677_vm1, %v676_v20, 0.0 }
  0xc4   : > { %1285 = vmatmul.msk.f32.vlgmr.msra.gmra.mxu1 %vm677_vm1, %v681_v18 }
  0xe8   : > { %679 = vadd.xlane.f32.xlu0 %v678_v21 }
 0x130   : > { %v860_v24 = vpop.permute.xlu0 %859 }
 0x131   : > { %1287 = vmatpush.xpose.msk.msra.mxu3 %vm649_vm0, %v860_v24 }
 0x134   : > { %1288 = vmatmul.msk.f32.vlgmr.msra.gmra.mxu3 %vm649_vm0, %v1716_v15 }
 0x141   : > { %v705_v27 = vpop.f32.mrf.mxu1 }
 0x142   : > { %v732_v30 = vmul.f32 2.0, %v705_v27 }
 0x15b   : > { %v680_v28 = vpop.xlane.xlu0 %679 }
 0x15c   : > { %v717_v29 = vperm.slane %v680_v28, %v716_v25 }
 0x15e   : > { %v731_v31 = vadd.f32 %v717_v29, %v712_v26 }
 0x160   : > { %v733_v32 = vsub.f32 %v731_v31, %v732_v30 }
 0x162   : > { %v734_v33 = vmax.f32 %v733_v32, 0.0 }
 0x164   : > { %v741_v35 = vmul.f32 %v739_v34, %v734_v33 }
 0x166   : > { %v742_v36 = vmul.f32 1.442695, %v741_v35 }
 0x168   : > { %1376 = vpow2.f32 %v742_v36 }
 0x16e   : > { %v1377_v37 = vpop.eup %1376 }
 0x16f   : > { %v744_v38 = vmax.f32 %v1377_v37, 0.01 }
 0x171   : > { %v746_v39 = vrot.slane %v744_v38, 1  ;;  %v747_v40 = vrot.slane %v744_v38, 2  ;;  %v748_v41 = vrot.slane %v744_v38, 3  ;;  %761 = vst.msk [vmem:[#allocation2] sm:$0x1] %vm760_vm2, %v744_v38  ;;  %v749_v42 = vrot.slane %v744_v38, 4 }
 0x172   : > { %v783_v43 = vperm.slane %v744_v38, 2  ;;  %v750_v44 = vrot.slane %v744_v38, 5  ;;  %v769_v45 = vperm.slane %v744_v38, 0  ;;  %v751_v46 = vrot.slane %v744_v38, 6 }
 0x173   : > { %762 = vst.msk [vmem:[#allocation2 + $0x1] sm:$0x1] %vm760_vm2, %v746_v39  ;;  %v752_v47 = vrot.slane %v744_v38, 7  ;;  %v797_v48 = vperm.slane %v744_v38, 4  ;;  %v776_v49 = vperm.slane %v744_v38, 1  ;;  %v811_v50 = vperm.slane %v744_v38, 6 }
 0x174   : > { %763 = vst.msk [vmem:[#allocation2 + $0x2] sm:$0x1] %vm760_vm2, %v747_v40  ;;  %788 = vperm.xlu1 %1371, %v783_v43   ;;  %774 = vperm.xlu2 %1370, %v769_v45   ;;  %v790_v51 = vperm.slane %v744_v38, 3  ;;  %v804_v52 = vperm.slane %v744_v38, 5  ;;  %v818_v53 = vperm.slane %v744_v38, 7 }
 0x175   : > { %764 = vst.msk [vmem:[#allocation2 + $0x3] sm:$0x1] %vm760_vm2, %v748_v41 }
 0x176   : > { %765 = vst.msk [vmem:[#allocation2 + $0x4] sm:$0x1] %vm760_vm2, %v749_v42 }
 0x177   : > { %766 = vst.msk [vmem:[#allocation2 + $0x5] sm:$0x1] %vm760_vm2, %v750_v44 }
 0x178   : > { %767 = vst.msk [vmem:[#allocation2 + $0x6] sm:$0x1] %vm760_vm2, %v751_v46 }
 0x179   : > { %768 = vst.msk [vmem:[#allocation2 + $0x7] sm:$0x1] %vm760_vm2, %v752_v47 }
 0x17c   : > { %802 = vperm.xlu1 %1371, %v797_v48   ;;  %781 = vperm.xlu2 %1370, %v776_v49  }
 0x184   : > { %816 = vperm.xlu1 %1371, %v811_v50   ;;  %795 = vperm.xlu2 %1370, %v790_v51  }
 0x18c   : > { %809 = vperm.xlu2 %1370, %v804_v52  }
 0x194   : > { %823 = vperm.xlu2 %1370, %v818_v53  }
 0x1b7   : > { %v882_v54 = vpop.f32.mrf.mxu3 }
 0x1b8   : > { %v888_v55 = vsel %vm887_vm3, %v882_v54, -1e+09 }
 0x1ce   : > { %v775_v56 = vpop.permute.xlu2 %774 }
 0x1cf   : > { %826 = vst.msk [vmem:[#allocation3] sm:$0xff] %vm825_vm4, %v775_v56 }
 0x1d6   : > { %v782_v57 = vpop.permute.xlu2 %781 }
 0x1d7   : > { %827 = vst.msk [vmem:[#allocation3 + $0x8] sm:$0xff] %vm825_vm4, %v782_v57 }
 0x1de   : > { %v796_v58 = vpop.permute.xlu2 %795 }
 0x1df   : > { %829 = vst.msk [vmem:[#allocation3 + $0x18] sm:$0xff] %vm825_vm4, %v796_v58 }
 0x1e6   : > { %v789_v59 = vpop.permute.xlu1 %788  ;;  %v810_v60 = vpop.permute.xlu2 %809 }
 0x1e7   : > { %828 = vst.msk [vmem:[#allocation3 + $0x10] sm:$0xff] %vm825_vm4, %v789_v59 }
 0x1e8   : > { %831 = vst.msk [vmem:[#allocation3 + $0x28] sm:$0xff] %vm825_vm4, %v810_v60 }
 0x1ee   : > { %v803_v61 = vpop.permute.xlu1 %802  ;;  %v824_v62 = vpop.permute.xlu2 %823 }
 0x1ef   : > { %830 = vst.msk [vmem:[#allocation3 + $0x20] sm:$0xff] %vm825_vm4, %v803_v61 }
 0x1f0   : > { %833 = vst.msk [vmem:[#allocation3 + $0x38] sm:$0xff] %vm825_vm4, %v824_v62 }
 0x1f6   : > { %v817_v63 = vpop.permute.xlu1 %816 }
 0x1f7   : > { %832 = vst.msk [vmem:[#allocation3 + $0x30] sm:$0xff] %vm825_vm4, %v817_v63 }
 0x1f8 LB: >> { %v1504_v1 = vmov 0   ;;  %s1289_s0 = sshll.u32 %s1499_s28, 3  ;;  %s896_s18 = scalar_lea.vmem [#allocation2], %s1499_s28  ;;  %s1499_s28 = sphi %s1748_s28, %s894_s28   ;;  %v1495_v0 = vphi %v1493_v0, %v1494_v0  }
 0x1f9   : >> { %1378 = vset.pattern.permute.xlu0 %v1504_v1  ;;  %s899_s21 = scalar_lea.vmem [#allocation3], %s1289_s0  ;;  %v1379_v3 = vld [vmem:[%s896_s18] ss:$0 sm:$0xff]  ;;  %s920_s26 = sld [smem:[#allocation6 + %s1499_s28]] }
 0x1fa   : >> { %s894_s28 = sadd.s32 1, %s1499_s28  }
 0x1fb   : >> { %p891_p0 = scmp.ge.s32.totalorder %s894_s28, 8  }
 0x1fc   : > { %s1505_s2 = smov (%p891_p0), 64   ;;  %s954_s30 = sld [smem:[#allocation5]] (%p891_p0)  ;;  %v1384_v50 = vld [vmem:[%s1891_s8] ss:$0 sm:$0xff] (%p891_p0)  ;;  %v1036_v63 = vld [vmem:[%s1895_s12 + $0x18] sm:$0xff] (%p891_p0) }
 0x1fd   : > { %v1385_v53 = vld [vmem:[%s1892_s9] ss:$0 sm:$0xff] (%p891_p0)  ;;  %1056 = vmatpush.msrb.mxu3 (%p891_p0), %v1036_v63  ;;  %s1295_s28 = sshll.u32 (%p891_p0), %s1636_s19, 3  ;;  %s1190_s19 = sshll.u32 (%p891_p0), %s635_s3, 4  ;;  %s1191_s19 = int_to_ptr.vmem [resolvable:$true] %s1190_s19 }
 0x1fe   : >> { %v900_v2 = vld [vmem:[%s899_s21] sm:$0xff]  ;;  %s1932_s23 = sand.u32 (%p891_p0), 1, %s1483_s24  }
 0x1ff   : >> { %903 = vperm.xlu0 %1378, %v900_v2   ;;  %v922_v16 = vstv %s920_s26  ;;  %v1033_v1 = vld [vmem:[%s1895_s12] sm:$0xff] (%p891_p0)  ;;  %s1178_s25 = scalar_lea.sflag (%p891_p0), [#allocation7], %s1932_s23  ;;  %s1437_s26 = scalar_lea.hbm (%p891_p0), %s1903_s20, 16 }
 0x202   : > { %s957_s22 = ssub.f32 (%p891_p0), 1.0, %s954_s30  ;;  %v955_v23 = vstv (%p891_p0), %s954_s30 }
 0x203   : > { %v956_v25 = vmul.f32 (%p891_p0), %v955_v23, %v1692_v5  ;;  %v1111_v23 = vld [vmem:[%s1897_s14 + $0x20] sm:$0xff] (%p891_p0) }
 0x204   : > { %v958_v24 = vstv (%p891_p0), %s957_s22 }
 0x271   : >> { %v904_v4 = vpop.permute.xlu0 %903 }
 0x272   : >> { %v906_v6 = vmul.f32 %v904_v4, %v888_v55 }
 0x274   : >> { %v910_v7 = vmul.f32 %v1379_v3, %v906_v6 }
 0x276   : >> { %v911_v8 = vsel %vm677_vm1, %v910_v7, -inf }
 0x277   : >> { %912 = vmax.xlane.f32.xlu0 %v911_v8 }
 0x28b   : > { %926 = vrot.lane.b32.xlu0 (%p891_p0), %v1716_v15, %s1505_s2  ;;  %v1506_v15 = vmov (%p891_p0), 32.0   ;;  %s1188_s2 = scalar_lea.hbm (%p891_p0), %s1903_s20, %s1295_s28 }
 0x28c   : > { %s1192_s27 = sshll.u32 (%p891_p0), %s1188_s2, 4  ;;  %s1193_s27 = int_to_ptr.hbm [resolvable:$true] %s1192_s27 }
 0x28d   : > { %s1431_s28 = sshra.s32 (%p891_p0), %s1193_s27, 4  ;;  %s1432_s28 = int_to_ptr.hbm [resolvable:$true] %s1431_s28 }
 0x28e   : > { %s1433_s0 = scalar_lea.hbm (%p891_p0), %s1432_s28, 8  ;;  %p1438_p4 = scmp.lt.s32.totalorder (%p891_p0), %s1432_s28, %s1903_s20 }
 0x28f   : > { %p1434_p1 = scmp.ne.s32.totalorder (%p891_p0), %s1432_s28, %s1433_s0  ;;  %p1439_p7 = scmp.lt.s32.totalorder (%p891_p0), %s1437_s26, %s1433_s0 }
 0x291   : > { %p1435_p2 = pnand (%p891_p0), %p1434_p1, %p1653_p5  ;;  %p1440_p8 = por (%p891_p0), %p1439_p7, %p1438_p4 }
 0x293   : > { %p1436_p3 = pneg (%p891_p0), %p1435_p2 }
 0x295   : > { %p1441_p9 = pnand (%p891_p0), %p1440_p8, %p1436_p3 }
 0x2ea   : >> { %v913_v9 = vpop.xlane.xlu0 %912 }
 0x2eb   : >> { %v914_v10 = vsub.f32 %v910_v7, %v913_v9 }
 0x2ed   : >> { %v915_v11 = vmul.f32 1.442695, %v914_v10 }
 0x2ef   : >> { %1380 = vpow2.f32 %v915_v11 }
 0x2f5   : >> { %v1381_v12 = vpop.eup %1380 }
 0x2f6   : >> { %v917_v13 = vsel %vm677_vm1, %v1381_v12, 0.0 }
 0x2f7   : >> { %918 = vadd.xlane.f32.xlu1 %v917_v13 }
 0x2fd   : > { %v927_v21 = vpop.permute.xlu0 (%p891_p0), %926 }
 0x2fe   : > { %947 = vmatpush.msrb.mxu1 (%p891_p0), %v927_v21  ;;  %v1112_v21 = vld [vmem:[%s1897_s14 + $0x28] sm:$0xff] (%p891_p0) }
 0x36a   : >> { %v919_v14 = vpop.xlane.xlu1 %918 }
 0x36b   : >> { %1382 = vrcp.f32 %v919_v14 }
 0x36c   : > { %1392 = vrcp.f32 (%p891_p0), %v1506_v15 }
 0x371   : >> { %v1383_v17 = vpop.eup %1382 }
 0x372   : >> { %v923_v18 = vmul.f32 %v1383_v17, %v922_v16  ;;  %v1393_v30 = vpop.eup (%p891_p0), %1392  ;;  %v1387_v16 = vld [vmem:[%s1894_s11] ss:$0 sm:$0xff] (%p891_p0) }
 0x373   : > { %v967_v31 = vmul.f32 (%p891_p0), 32.0, %v1393_v30  ;;  %vm971_vm5 = vweird.f32 (%p891_p0), %v1393_v30 }
 0x374   : >> { %v924_v19 = vmul.f32 %v1381_v12, %v923_v18  ;;  %893 = sbr.rel (!%p891_p0) target bundleno = 504 (0x1f8), region = 149  ;;  %v1386_v12 = vld [vmem:[%s1893_s10] ss:$0 sm:$0xff] (%p891_p0) }
 0x375   : > { %v968_v32 = vsub.f32 (%p891_p0), 1.0, %v967_v31 }
 0x376   : >> { %v925_v20 = vadd.f32 %v1495_v0, %v924_v19   ;;  %v1114_v19 = vld [vmem:[%s1897_s14 + $0x38] sm:$0xff] (%p891_p0) }
 0x377   : > { %v969_v33 = vmul.f32 (%p891_p0), %v1393_v30, %v968_v32  ;;  %1131 = vmatpush.msra.mxu0 (%p891_p0), %v1114_v19 }
 0x378   : >> { %v1494_v0 = vmov %v925_v20   ;;  %1290 = vmatmul.msk.f32.vlgmr.msrb.gmra.mxu1 (%p891_p0), %vm677_vm1, %v925_v20  ;;  %v1113_v20 = vld [vmem:[%s1897_s14 + $0x30] sm:$0xff] (%p891_p0)  ;;  %vm1119_vm1 = vcmask (%p891_p0), 523264  }
 0x379   : > { %v970_v34 = vadd.f32 %v1393_v30, %v969_v33  ;;  %v1035_v0 = vld [vmem:[%s1895_s12 + $0x10] sm:$0xff]  ;;  %1132 = vmatpush.msra.mxu0 %v1113_v20 }
 0x37a   : > { %1057 = vmatpush.msrb.mxu3 %v1035_v0 }
 0x37b   : > { %v1766_v35 = vsel %vm971_vm5, %v1393_v30, %v970_v34  ;;  %1133 = vmatpush.msra.mxu0 %v1112_v21  ;;  %v1107_v30 = vld [vmem:[%s1897_s14] sm:$0xff] }
 0x37d   : > { %1134 = vmatpush.msra.mxu0 %v1111_v23 }
 0x3f5   : > { %v949_v22 = vpop.f32.mrf.mxu1 }
 0x3f6   : > { %952 = vst.msk [vmem:[#allocation4] sm:$0xff] %vm649_vm0, %v949_v22  ;;  %v1388_v22 = vld [vmem:[%s1896_s13] ss:$0 sm:$0xff] }
 0x3fd   : > { %v953_v26 = vld [vmem:[#allocation4] sm:$0xff] }
 0x3fe   : > { %v959_v27 = vmul.f32 %v958_v24, %v953_v26  ;;  %v1110_v24 = vld [vmem:[%s1897_s14 + $0x18] sm:$0xff] }
 0x3ff   : > { %1135 = vmatpush.msra.mxu0 %v1110_v24  ;;  %v1390_v24 = vld [vmem:[%s1899_s16] ss:$0 sm:$0xff] }
 0x400   : > { %v960_v28 = vadd.f32 %v959_v27, %v956_v25  ;;  %v1109_v27 = vld [vmem:[%s1897_s14 + $0x10] sm:$0xff] }
 0x401   : > { %1136 = vmatpush.msra.mxu0 %v1109_v27 }
 0x402   : > { %v963_v29 = vsel %vm649_vm0, %v960_v28, 0.0 }
 0x403   : > { %964 = vadd.xlane.f32.xlu0 %v963_v29  ;;  %v1108_v29 = vld [vmem:[%s1897_s14 + $0x8] sm:$0xff] }
 0x404   : > { %1137 = vmatpush.msra.mxu0 %v1108_v29 }
 0x406   : > { %1138 = vmatpush.msra.mxu0 %v1107_v30 }
 0x476   : > { %v965_v36 = vpop.xlane.xlu0 %964 }
 0x477   : > { %v973_v37 = vmul.f32 %v1766_v35, %v965_v36 }
 0x479   : > { %v974_v38 = vsub.f32 %v960_v28, %v973_v37 }
 0x47b   : > { %v975_v39 = vmul.f32 %v974_v38, %v974_v38 }
 0x47d   : > { %v976_v40 = vsel %vm649_vm0, %v975_v39, 0.0 }
 0x47e   : > { %977 = vadd.xlane.f32.xlu1 %v976_v40 }
 0x4f1   : > { %v978_v41 = vpop.xlane.xlu1 %977 }
 0x4f2   : > { %v979_v42 = vmul.f32 %v978_v41, %v1766_v35 }
 0x4f4   : > { %v980_v43 = vadd.f32 1e-05, %v979_v42 }
 0x4f6   : > { %1394 = vrsqrt.f32 %v980_v43  ;;  %vm987_vm7 = vweird.f32 %v980_v43 }
 0x4fc   : > { %v1395_v44 = vpop.eup %1394 }
 0x4fd   : > { %v982_v45 = vmul.f32 %v1395_v44, %v980_v43  ;;  %vm988_vm6 = vweird.f32 %v1395_v44 }
 0x4fe   : > { %vm989_vm8 = vmor %vm987_vm7, %vm988_vm6 }
 0x4ff   : > { %v983_v46 = vmul.f32 %v1395_v44, %v982_v45 }
 0x501   : > { %v984_v47 = vmul.f32 0.5, %v983_v46 }
 0x503   : > { %v985_v48 = vsub.f32 1.5, %v984_v47 }
 0x505   : > { %v986_v49 = vmul.f32 %v1395_v44, %v985_v48 }
 0x507   : > { %v990_v51 = vsel %vm989_vm8, %v1395_v44, %v986_v49 }
 0x508   : > { %v991_v52 = vmul.f32 %v990_v51, %v974_v38 }
 0x50a   : > { %v995_v54 = vmul.f32 %v1384_v50, %v991_v52 }
 0x50c   : > { %v999_v55 = vadd.f32 %v1385_v53, %v995_v54 }
 0x50e   : > { %v1000_v56 = vadd.f32 %v999_v55, %v1692_v5  ;;  %v1034_v5 = vld [vmem:[%s1895_s12 + $0x8] sm:$0xff] }
 0x50f   : > { %1058 = vmatpush.msrb.mxu3 %v1034_v5 }
 0x510   : > { %v1003_v57 = vsel %vm649_vm0, %v1000_v56, 0.0 }
 0x511   : > { %1004 = vadd.xlane.f32.xlu1 %v1003_v57  ;;  %1059 = vmatpush.msrb.mxu3 %v1033_v1 }
 0x584   : > { %v1005_v58 = vpop.xlane.xlu1 %1004 }
 0x585   : > { %v1006_v59 = vmul.f32 %v1005_v58, %v1766_v35 }
 0x587   : > { %v1007_v60 = vsub.f32 %v1000_v56, %v1006_v59 }
 0x589   : > { %v1008_v61 = vmul.f32 %v1007_v60, %v1007_v60 }
 0x58b   : > { %v1009_v62 = vsel %vm649_vm0, %v1008_v61, 0.0 }
 0x58c   : > { %1010 = vadd.xlane.f32.xlu2 %v1009_v62 }
 0x5ff   : > { %v1011_v2 = vpop.xlane.xlu2 %1010 }
 0x600   : > { %v1012_v3 = vmul.f32 %v1011_v2, %v1766_v35 }
 0x602   : > { %v1013_v4 = vadd.f32 1e-05, %v1012_v3  ;;  %v1389_v3 = vld [vmem:[%s1898_s15] ss:$0 sm:$0xff] }
 0x604   : > { %1396 = vrsqrt.f32 %v1013_v4  ;;  %vm1020_vm10 = vweird.f32 %v1013_v4 }
 0x60a   : > { %v1397_v6 = vpop.eup %1396 }
 0x60b   : > { %v1015_v7 = vmul.f32 %v1397_v6, %v1013_v4  ;;  %vm1021_vm9 = vweird.f32 %v1397_v6 }
 0x60c   : > { %vm1022_vm11 = vmor %vm1020_vm10, %vm1021_vm9 }
 0x60d   : > { %v1016_v8 = vmul.f32 %v1397_v6, %v1015_v7 }
 0x60f   : > { %v1017_v9 = vmul.f32 0.5, %v1016_v8 }
 0x611   : > { %v1018_v10 = vsub.f32 1.5, %v1017_v9 }
 0x613   : > { %v1019_v11 = vmul.f32 %v1397_v6, %v1018_v10 }
 0x615   : > { %v1023_v13 = vsel %vm1022_vm11, %v1397_v6, %v1019_v11 }
 0x616   : > { %v1024_v14 = vmul.f32 %v1023_v13, %v1007_v60 }
 0x618   : > { %v1028_v17 = vmul.f32 %v1386_v12, %v1024_v14 }
 0x61a   : > { %v1800_v18 = vadd.f32 %v1387_v16, %v1028_v17 }
 0x61c   : > { %1291 = vmatmul.msk.f32.vlgmr.msrb.gmra.mxu3 %vm649_vm0, %v1800_v18 }
 0x69f   : > { %v1061_v25 = vpop.f32.mrf.mxu3 }
 0x6a0   : > { %v1062_v26 = vadd.f32 %v1388_v22, %v1061_v25 }
 0x6a2   : > { %v1064_v28 = vmul.f32 0.70710677, %v1062_v26  ;;  %v1104_v5 = vmul.f32 0.5, %v1062_v26  ;;  %v1391_v26 = vld [vmem:[%s1900_s17] ss:$0 sm:$0xff] }
 0x6a4   : > { %v1292_v15 = vclamps-f32 %v1064_v28, 4.0 }
 0x6a6   : > { %v1067_v31 = vmul.f32 %v1292_v15, %v1292_v15 }
 0x6a8   : > { %v1076_v32 = vmul.f32 -1.1791603e-07, %v1067_v31  ;;  %v1068_v37 = vmul.f32 0.00022905065, %v1067_v31 }
 0x6aa   : > { %v1077_v33 = vadd.f32 2.3547966e-05, %v1076_v32  ;;  %v1069_v40 = vadd.f32 0.003408291, %v1068_v37 }
 0x6ac   : > { %v1078_v34 = vmul.f32 %v1077_v33, %v1067_v31  ;;  %v1070_v43 = vmul.f32 %v1069_v40, %v1067_v31 }
 0x6ae   : > { %v1079_v36 = vadd.f32 0.0010179626, %v1078_v34  ;;  %v1071_v46 = vadd.f32 0.050955694, %v1070_v43 }
 0x6b0   : > { %v1080_v38 = vmul.f32 %v1079_v36, %v1067_v31  ;;  %v1072_v49 = vmul.f32 %v1071_v46, %v1067_v31 }
 0x6b2   : > { %v1081_v39 = vadd.f32 0.01407047, %v1080_v38  ;;  %v1073_v50 = vadd.f32 0.18520832, %v1072_v49 }
 0x6b4   : > { %v1082_v41 = vmul.f32 %v1081_v39, %v1067_v31  ;;  %v1074_v52 = vmul.f32 %v1073_v50, %v1067_v31 }
 0x6b6   : > { %v1083_v42 = vadd.f32 0.11098505, %v1082_v41  ;;  %v1075_v56 = vadd.f32 1.1283791, %v1074_v52 }
 0x6b8   : > { %v1084_v44 = vmul.f32 %v1083_v42, %v1067_v31  ;;  %v1088_v61 = vmul.f32 %v1292_v15, %v1075_v56 }
 0x6ba   : > { %v1085_v45 = vadd.f32 0.49746925, %v1084_v44 }
 0x6bc   : > { %v1086_v47 = vmul.f32 %v1085_v45, %v1067_v31 }
 0x6be   : > { %v1087_v48 = vadd.f32 1.0, %v1086_v47 }
 0x6c0   : > { %1398 = vrcp.f32 %v1087_v48  ;;  %v1100_v55 = vand.u32 2147483648, %v1087_v48  ;;  %v1098_v58 = vand.u32 2147483647, %v1087_v48  ;;  %vm1094_vm13 = vweird.f32 %v1087_v48 }
 0x6c2   : > { %v1101_v60 = vor.u32 1.1754944e-38, %v1100_v55  ;;  %vm1099_vm15 = vcmp.eq.f32.partialorder %v1098_v58, 8.507059e+37 }
 0x6c6   : > { %v1399_v51 = vpop.eup %1398 }
 0x6c7   : > { %v1090_v53 = vmul.f32 %v1399_v51, %v1087_v48  ;;  %vm1095_vm12 = vweird.f32 %v1399_v51 }
 0x6c8   : > { %vm1096_vm14 = vmor %vm1094_vm13, %vm1095_vm12 }
 0x6c9   : > { %v1091_v54 = vsub.f32 1.0, %v1090_v53 }
 0x6cb   : > { %v1092_v57 = vmul.f32 %v1399_v51, %v1091_v54 }
 0x6cd   : > { %v1093_v59 = vadd.f32 %v1399_v51, %v1092_v57 }
 0x6cf   : > { %v1097_v62 = vsel %vm1096_vm14, %v1399_v51, %v1093_v59 }
 0x6d0   : > { %v1102_v63 = vsel %vm1099_vm15, %v1101_v60, %v1097_v62 }
 0x6d1   : > { %v1103_v0 = vmul.f32 %v1102_v63, %v1088_v61 }
 0x6d3   : > { %v1105_v1 = vadd.f32 1.0, %v1103_v0 }
 0x6d5   : > { %v1106_v2 = vmul.f32 %v1105_v1, %v1104_v5 }
 0x6d7   : > { %1293 = vmatmul.msk.f32.vlgmr.msra.gmra.mxu0 %vm1119_vm1, %v1106_v2 }
 0x754   : > { %v1140_v4 = vpop.f32.mrf.mxu0 }
 0x755   : > { %v1141_v6 = vadd.f32 %v1389_v3, %v1140_v4 }
 0x757   : > { %v1143_v7 = vadd.f32 %v1141_v6, %v1800_v18 }
 0x759   : > { %v1146_v8 = vsel %vm649_vm0, %v1143_v7, 0.0 }
 0x75a   : > { %1147 = vadd.xlane.f32.xlu2 %v1146_v8 }
 0x7cd   : > { %v1148_v9 = vpop.xlane.xlu2 %1147 }
 0x7ce   : > { %v1149_v10 = vmul.f32 %v1148_v9, %v1766_v35 }
 0x7d0   : > { %v1150_v11 = vsub.f32 %v1143_v7, %v1149_v10 }
 0x7d2   : > { %v1151_v12 = vmul.f32 %v1150_v11, %v1150_v11 }
 0x7d4   : > { %v1152_v13 = vsel %vm649_vm0, %v1151_v12, 0.0 }
 0x7d5   : > { %1153 = vadd.xlane.f32.xlu1 %v1152_v13 }
 0x848   : > { %v1154_v14 = vpop.xlane.xlu1 %1153 }
 0x849   : > { %v1155_v16 = vmul.f32 %v1154_v14, %v1766_v35 }
 0x84b   : > { %v1156_v17 = vadd.f32 1e-05, %v1155_v16 }
 0x84d   : > { %1400 = vrsqrt.f32 %v1156_v17  ;;  %vm1163_vm3 = vweird.f32 %v1156_v17 }
 0x853   : > { %v1401_v19 = vpop.eup %1400 }
 0x854   : > { %v1158_v18 = vmul.f32 %v1401_v19, %v1156_v17  ;;  %vm1164_vm2 = vweird.f32 %v1401_v19 }
 0x855   : > { %vm1165_vm4 = vmor %vm1163_vm3, %vm1164_vm2 }
 0x856   : > { %v1159_v20 = vmul.f32 %v1401_v19, %v1158_v18 }
 0x858   : > { %v1160_v21 = vmul.f32 0.5, %v1159_v20 }
 0x85a   : > { %v1161_v22 = vsub.f32 1.5, %v1160_v21 }
 0x85c   : > { %v1162_v23 = vmul.f32 %v1401_v19, %v1161_v22 }
 0x85e   : > { %v1166_v35 = vsel %vm1165_vm4, %v1401_v19, %v1162_v23 }
 0x85f   : > { %v1167_v25 = vmul.f32 %v1166_v35, %v1150_v11 }
 0x861   : > { %v1171_v27 = vmul.f32 %v1390_v24, %v1167_v25 }
 0x863   : > { %v1175_v28 = vadd.f32 %v1391_v26, %v1171_v27 }
 0x865   : > { %1176 = vst.msk [vmem:[%s635_s3] sm:$0xff] %vm649_vm0, %v1175_v28 }
 0x866   : > { %1444 = shalt.err (!%p1441_p9)
}
 0x867   : > { %1302 = dma.vmem_to_hbm [thread:$0]  (%p1653_p5), %s1191_s19, 128, %s1193_s27, %s1178_s25  }
 0x868 PF: > { %s1933_s1 = sld [smem:[#allocation14_spill]] }
 0x869   : > { %s1934_s3 = sld [smem:[#allocation12_spill]] }
 0x86e   : > { %p1314_p10 = scmp.ge.s32.totalorder %s1933_s1, 2 }
 0x86f   : > { %s1204_s23 = sand.u32 1, %s1934_s3  }
 0x870   : > { %p1309_p11 = pnand %p1314_p10, %p1657_p6  ;;  %s1205_s21 = scalar_lea.sflag [#allocation7], %s1204_s23 }
 0x872   : > { %p1310_p12 = pneg %p1309_p11 }
 0x874   : > { %1474 = dma.done.wait (%p1310_p12), %s1205_s21, 128  }
 0x875   : > { %1476 = vsyncadd (%p1310_p12), %s1205_s21, 4294967168  ;;  %s1936_s25 = sld [smem:[#allocation15_spill]]  ;;  %s1939_s23 = smov %s1483_s24 }
 0x876   : > { %s1937_s28 = sld [smem:[#allocation13_spill]] }
 0x877   : > { %s1938_s2 = sld [smem:[#allocation16_spill]] }
 0x87b   : > { %p32_p13 = scmp.ge.s32.totalorder %s1936_s25, 4  }
 0x87c   : > { %s1940_s24 = smov %s1937_s28 }
 0x87d   :  { %34 = sbr.rel (!%p32_p13) target bundleno = 12 (0xc), region = 160 }
 0x882   :  { %1211 = vsyncpa [#allocation7], 1 }
 0x883   :  { %1213 = vsyncpa [#allocation7 + $0x1], 1 }
 0x884   :  { %1214 = vsyncpa [#allocation8], 1 }
 0x885   :  { %1216 = vsyncpa [#allocation8 + $0x1], 1 }

</bundles_post_ra>
